<compile_context>
chip_gen: v7x
topology: tpu7x:2x2x1
jax: 0.10.0
libtpu: 0.0.40
codegen_flags: <defaults>
</compile_context>

<pallas_src>
import jax
import jax.numpy as jnp
from jax.experimental import pallas as pl
from jax.experimental.pallas import tpu as pltpu

LANE = 128                 # TPU lane width
F_IN, F_H, F_OUT = 2, 10, 5

# Column layout of the packed parameter block, shape (10, 25):
#   [ 0: 2)  W1 (BN-folded)        (10, 2)
#   [ 2: 3)  b1 (BN-folded)        (10, 1)
#   [ 3:13)  W2                    (10, 10)
#   [13:14)  b2                    (10, 1)
#   [14:24)  W3 zero-padded        (10, 10)   (real rows 0:5)
#   [24:25)  b3 zero-padded        (10, 1)    (real rows 0:5)


def bjnet_kernel(p_ref, xT_ref, yT_ref):
    p = p_ref[...]                        # (10, 25) packed params
    xT = xT_ref[...]                      # (2, TB)  batch on lanes

    # layer1: Linear(2->10) + folded BatchNorm + ReLU.
    # K=2 contraction as two lane-broadcast FMAs on the VPU (keeps MXU free,
    # avoids padding a depth-2 contraction to 128/256 MXU depth).
    h = (p[:, 0:1] * xT[0:1, :]
         + p[:, 1:2] * xT[1:2, :]
         + p[:, 2:3])                     # (10, TB)
    h = jnp.maximum(h, 0.0)

    # layer2: Linear(10->10) + tanh (dropout = identity at inference).
    h = jnp.dot(p[:, 3:13], h,
                preferred_element_type=jnp.float32,
                precision=jax.lax.Precision.HIGHEST) + p[:, 13:14]
    h = jnp.tanh(h)                       # (10, TB)

    # layer3: Linear(10->5), W3 zero-padded to 10 output rows; keep first 5.
    y = jnp.dot(p[:, 14:24], h,
                preferred_element_type=jnp.float32,
                precision=jax.lax.Precision.HIGHEST) + p[:, 24:25]
    yT_ref[...] = y[0:F_OUT, :]           # (5, TB)


def _pack_params(params, eps=1e-5):
    """Fold eval-mode BN into layer1 and pack everything into one (10,25) block."""
    scale = params["bn_gamma"] / jnp.sqrt(params["bn_var"] + eps)         # (10,)
    shift = params["bn_beta"] - params["bn_mean"] * scale                 # (10,)
    w1f = params["w1"] * scale[:, None]                                   # (10, 2)
    b1f = params["b1"] * scale + shift                                    # (10,)
    w3p = jnp.concatenate(
        [params["w3"], jnp.zeros((F_H - F_OUT, F_H), jnp.float32)], axis=0)   # (10, 10)
    b3p = jnp.concatenate(
        [params["b3"], jnp.zeros((F_H - F_OUT,), jnp.float32)])               # (10,)
    packed = jnp.concatenate(
        [w1f, b1f[:, None],
         params["w2"], params["b2"][:, None],
         w3p, b3p[:, None]],
        axis=1)
    return packed.astype(jnp.float32)                                     # (10, 25)


def bjnet_forward(x, params, *, block_b=2048):
    """x: (B, 2) float32. Returns (B, 5) float32."""
    B = x.shape[0]
    packed = _pack_params(params)

    # Lane-aligned batch tile; pad batch to a whole number of tiles.
    tb = max(LANE, min(block_b, pl.cdiv(B, LANE) * LANE))
    b_pad = pl.cdiv(B, tb) * tb
    xT = jnp.pad(x, ((0, b_pad - B), (0, 0))).T                           # (2, b_pad)

    yT = pl.pallas_call(
        bjnet_kernel,
        out_shape=jax.ShapeDtypeStruct((F_OUT, b_pad), jnp.float32),
        grid=(b_pad // tb,),
        in_specs=[
            pl.BlockSpec((F_H, 25), lambda i: (0, 0)),     # params: resident, 1 DMA
            pl.BlockSpec((F_IN, tb), lambda i: (0, i)),    # x tile (batch on lanes)
        ],
        out_specs=pl.BlockSpec((F_OUT, tb), lambda i: (0, i)),
        compiler_params=pltpu.CompilerParams(
            dimension_semantics=("parallel",)),            # v7x: 2 TCs split the batch
    )(packed, xT)

    return yT[:, :B].T                                                    # (B, 5)


def init_params(key):
    """Deterministic synthetic parameters matching BJNet's shapes (PyTorch (out,in))."""
    ks = jax.random.split(key, 8)
    return {
        # layer1: Linear(2, 10) + BatchNorm1d(10)
        "w1": jax.random.normal(ks[0], (10, 2), jnp.float32) * 0.5,
        "b1": jax.random.normal(ks[1], (10,), jnp.float32) * 0.1,
        "bn_gamma": jnp.ones((10,), jnp.float32) * 1.1,
        "bn_beta": jnp.full((10,), 0.05, jnp.float32),
        "bn_mean": jax.random.normal(ks[2], (10,), jnp.float32) * 0.1,
        "bn_var": jnp.abs(jax.random.normal(ks[3], (10,), jnp.float32)) + 0.5,
        # layer2: Linear(10, 10)
        "w2": jax.random.normal(ks[4], (10, 10), jnp.float32) * 0.3,
        "b2": jax.random.normal(ks[5], (10,), jnp.float32) * 0.1,
        # layer3: Linear(10, 5)  -- PyTorch stores (out_features, in_features)
        "w3": jax.random.normal(ks[6], (5, 10), jnp.float32) * 0.3,
        "b3": jax.random.normal(ks[7], (5,), jnp.float32) * 0.1,
    }


def reference_forward(x, params):
    """Pure-JAX reference of the same forward pass (inference mode)."""
    eps = 1e-5
    hp = jax.lax.Precision.HIGHEST
    scale = params["bn_gamma"] / jnp.sqrt(params["bn_var"] + eps)
    shift = params["bn_beta"] - params["bn_mean"] * scale
    h = jnp.dot(x, params["w1"].T, precision=hp) + params["b1"]
    h = h * scale + shift
    h = jnp.maximum(h, 0.0)
    h = jnp.tanh(jnp.dot(h, params["w2"].T, precision=hp) + params["b2"])
    return jnp.dot(h, params["w3"].T, precision=hp) + params["b3"]


if __name__ == "__main__":
    key = jax.random.PRNGKey(0)
    k_x, k_p = jax.random.split(key)

    B = 32  # small batch; padded to one 128-lane tile inside the wrapper
    x = jax.random.normal(k_x, (B, 2), jnp.float32)
    params = init_params(k_p)

    y = jax.block_until_ready(bjnet_forward(x, params))
    y_ref = reference_forward(x, params)

    assert y.shape == (B, 5), y.shape
    assert jnp.allclose(y, y_ref, atol=1e-4, rtol=1e-4), \
        float(jnp.max(jnp.abs(y - y_ref)))

    print("KERNEL_OK")
</pallas_src>

<mosaic_0001>
module attributes {stable_mosaic.version = 11 : i64} {
  func.func @bjnet_kernel(%arg0: i32, %arg1: memref<10x25xf32, #tpu.memory_space<vmem>>, %arg2: memref<2x128xf32, #tpu.memory_space<vmem>>, %arg3: memref<5x128xf32, #tpu.memory_space<vmem>>) attributes {dimension_semantics = [#tpu.dimension_semantics<parallel>], iteration_bounds = array<i64: 1>, scalar_prefetch = 0 : i64, scratch_operands = 0 : i64, tpu.core_type = #tpu.core_type<tc>, window_params = [{pipeline_mode = #tpu.pipeline_mode<synchronous>, transform_indices = @transform_0, window_bounds = array<i64: 10, 25>}, {transform_indices = @transform_1, window_bounds = array<i64: 2, 128>}, {transform_indices = @transform_2, window_bounds = array<i64: 5, 128>}]} {
    %c0 = arith.constant 0 : index
    %c0_0 = arith.constant 0 : index
    %0 = vector.load %arg1[%c0, %c0_0] : memref<10x25xf32, #tpu.memory_space<vmem>>, vector<10x25xf32>
    %c0_1 = arith.constant 0 : index
    %c0_2 = arith.constant 0 : index
    %1 = vector.load %arg2[%c0_1, %c0_2] : memref<2x128xf32, #tpu.memory_space<vmem>>, vector<2x128xf32>
    %2 = vector.extract_strided_slice %0 {offsets = [0, 0], sizes = [10, 1], strides = [1, 1]} : vector<10x25xf32> to vector<10x1xf32>
    %3 = vector.extract_strided_slice %1 {offsets = [0, 0], sizes = [1, 128], strides = [1, 1]} : vector<2x128xf32> to vector<1x128xf32>
    %4 = vector.broadcast %2 : vector<10x1xf32> to vector<10x128xf32>
    %5 = vector.broadcast %3 : vector<1x128xf32> to vector<10x128xf32>
    %6 = arith.mulf %4, %5 : vector<10x128xf32>
    %7 = vector.extract_strided_slice %0 {offsets = [0, 1], sizes = [10, 1], strides = [1, 1]} : vector<10x25xf32> to vector<10x1xf32>
    %8 = vector.extract_strided_slice %1 {offsets = [1, 0], sizes = [1, 128], strides = [1, 1]} : vector<2x128xf32> to vector<1x128xf32>
    %9 = vector.broadcast %7 : vector<10x1xf32> to vector<10x128xf32>
    %10 = vector.broadcast %8 : vector<1x128xf32> to vector<10x128xf32>
    %11 = arith.mulf %9, %10 : vector<10x128xf32>
    %12 = arith.addf %6, %11 : vector<10x128xf32>
    %13 = vector.extract_strided_slice %0 {offsets = [0, 2], sizes = [10, 1], strides = [1, 1]} : vector<10x25xf32> to vector<10x1xf32>
    %14 = vector.broadcast %13 : vector<10x1xf32> to vector<10x128xf32>
    %15 = arith.addf %12, %14 : vector<10x128xf32>
    %cst = arith.constant 0.000000e+00 : f32
    %16 = vector.broadcast %cst : f32 to vector<10x128xf32>
    %17 = arith.maximumf %15, %16 : vector<10x128xf32>
    %18 = vector.extract_strided_slice %0 {offsets = [0, 3], sizes = [10, 10], strides = [1, 1]} : vector<10x25xf32> to vector<10x10xf32>
    %cst_3 = arith.constant dense<0.000000e+00> : vector<10x128xf32>
    %19 = tpu.matmul %18, %17, %cst_3 {dimension_numbers = #tpu.dot_dimension_numbers<[1], [0], [0], [1], [0, 0, 1, 1], [], []>, precision = #tpu.contract_precision<fp32>} : vector<10x10xf32>, vector<10x128xf32>, vector<10x128xf32> -> vector<10x128xf32>
    %20 = vector.extract_strided_slice %0 {offsets = [0, 13], sizes = [10, 1], strides = [1, 1]} : vector<10x25xf32> to vector<10x1xf32>
    %21 = vector.broadcast %20 : vector<10x1xf32> to vector<10x128xf32>
    %22 = arith.addf %19, %21 : vector<10x128xf32>
    %23 = math.tanh %22 : vector<10x128xf32>
    %24 = vector.extract_strided_slice %0 {offsets = [0, 14], sizes = [10, 10], strides = [1, 1]} : vector<10x25xf32> to vector<10x10xf32>
    %cst_4 = arith.constant dense<0.000000e+00> : vector<10x128xf32>
    %25 = tpu.matmul %24, %23, %cst_4 {dimension_numbers = #tpu.dot_dimension_numbers<[1], [0], [0], [1], [0, 0, 1, 1], [], []>, precision = #tpu.contract_precision<fp32>} : vector<10x10xf32>, vector<10x128xf32>, vector<10x128xf32> -> vector<10x128xf32>
    %26 = vector.extract_strided_slice %0 {offsets = [0, 24], sizes = [10, 1], strides = [1, 1]} : vector<10x25xf32> to vector<10x1xf32>
    %27 = vector.broadcast %26 : vector<10x1xf32> to vector<10x128xf32>
    %28 = arith.addf %25, %27 : vector<10x128xf32>
    %29 = vector.extract_strided_slice %28 {offsets = [0, 0], sizes = [5, 128], strides = [1, 1]} : vector<10x128xf32> to vector<5x128xf32>
    %c0_5 = arith.constant 0 : index
    %c0_6 = arith.constant 0 : index
    %30 = vector.load %arg3[%c0_5, %c0_6] : memref<5x128xf32, #tpu.memory_space<vmem>>, vector<5x128xf32>
    tpu.vector_store %arg3[%c0_5, %c0_6], %29 {strides = array<i32>} : memref<5x128xf32, #tpu.memory_space<vmem>>, vector<5x128xf32>,
    return
  }
  func.func @transform_0(%arg0: i32) -> (i32, i32) {
    %c0_i32 = arith.constant 0 : i32
    %c0_i32_0 = arith.constant 0 : i32
    %c0_i32_1 = arith.constant 0 : i32
    return %c0_i32, %c0_i32_0 : i32, i32
  }
  func.func @transform_1(%arg0: i32) -> (i32, i32) {
    %c0_i32 = arith.constant 0 : i32
    %c0_i32_0 = arith.constant 0 : i32
    return %c0_i32, %arg0 : i32, i32
  }
  func.func @transform_2(%arg0: i32) -> (i32, i32) {
    %c0_i32 = arith.constant 0 : i32
    %c0_i32_0 = arith.constant 0 : i32
    return %c0_i32, %arg0 : i32, i32
  }
}

</mosaic_0001>

<bundles_post_ra>
// kernel: tpu_custom_call.1
= control target key start
LH: loop header
LB: loop body
LE: loop exit
PB: predicated region body
PF: predicated region fallthrough
CT: control target
= control target key end

     0   :  { %7 = vsyncpa [#allocation3], 0  ;;  %s1472_s0 = inlined_call_operand.hbm [shape: f32[10,25], index: 0, kind: input, shape index: {}]   ;;  %s1473_s1 = inlined_call_operand.vmem [shape: f32[2,128], index: 1, kind: input, shape index: {}]   ;;  %s1474_s2 = inlined_call_operand.hbm [shape: f32[5,128], index: 2, kind: output, shape index: {}]  }
   0x1   :  { %8 = vsyncpa [#allocation4], 0  ;;  %s1404_s9 = smov [#allocation2]   ;;  %s1356_s13 = scalar_lea.hbm %s1472_s0, 256 }
   0x2   :  { %s14_s10 = sshll.u32 %s1404_s9, 4  ;;  %p1357_p0 = scmp.ne.s32.totalorder %s1472_s0, %s1356_s13  ;;  %s15_s10 = int_to_ptr.vmem [resolvable:$true] %s14_s10 }
   0x3   :  { %p1360_p1 = scmp.lt.u32.totalorder %s1356_s13, %s1472_s0 }
   0x5   :  { %p1362_p2 = pnand %p1360_p1, %p1357_p0 }
   0x7   :  { %1365 = shalt.err (!%p1362_p2)
}
   0x8   :  { %s1366_s18 = scalar_lea.vmem %s15_s10, 256  ;;  %p1371_p4 = scmp.lt.s32.totalorder %s15_s10, %s15_s10 }
   0x9   :  { %p1367_p3 = scmp.ne.s32.totalorder %s15_s10, %s1366_s18  ;;  %p1372_p5 = scmp.lt.s32.totalorder %s1366_s18, %s1366_s18 }
   0xb   :  { %p1373_p6 = por %p1372_p5, %p1371_p4 }
   0xd   :  { %p1374_p7 = pnand %p1373_p6, %p1367_p3 }
   0xf   :  { %1377 = shalt.err (!%p1374_p7)
}
  0x10   :  { %s1405_s19 = smov 128   ;;  %s1406_s20 = smov 8  }
  0x11   :  { %20 = dma.hbm_to_vmem [thread:$0]  %s1472_s0, 256, %s15_s10, [#allocation3], %s1405_s19, %s1405_s19, %s1406_s20  }
  0x12   :  { %1400 = dma.done.wait [#allocation3], 256  }
  0x13   :  { %1401 = vsyncadd [#allocation3], 4294967040  ;;  %v1407_v0 = vmov 0   ;;  %v27_v1 = vld [vmem:[#allocation2 + $0x8] sm:$0x3]  ;;  %v1442_v2 = vld [vmem:[#allocation2] sm:$0xff]  ;;  %v39_v6 = vlaneseq }
  0x14   :  { %1344 = vset.pattern.permute.xlu1 %v1407_v0  ;;  %1342 = vset.pattern.permute.xlu0 %v1407_v0  ;;  %v1408_v3 = vmov 1   ;;  %v1409_v4 = vmov 2   ;;  %s1410_s0 = smov 125   ;;  %v1411_v5 = vmov 13   ;;  %s1412_s23 = smov 114   ;;  %vm90_vm0 = vcmask 1041408  }
  0x15   :  { %36 = vperm.xlu0 %1342, %v27_v1   ;;  %31 = vperm.xlu1 %1344, %v1442_v2   ;;  %v40_v7 = vshrl.u32 %v39_v6, 7  ;;  %v28_v10 = vld [vmem:[%s1473_s1] sm:$0x3]  ;;  %vm85_vm1 = vcmask 80896   ;;  %s1414_s1 = smov [#allocation5]  }
  0x16   :  { %s1119_s26 = sshll.u32 %s1414_s1, 4  ;;  %s1120_s26 = int_to_ptr.vmem [resolvable:$true] %s1119_s26 }
  0x17   :  { %v41_v8 = vsub.s32 0, %v40_v7  ;;  %v55_v9 = vsub.s32 1, %v40_v7  ;;  %s1378_s27 = scalar_lea.vmem %s1120_s26, 128  ;;  %p1383_p9 = scmp.lt.s32.totalorder %s1120_s26, %s1120_s26 }
  0x18   :  { %p1379_p8 = scmp.ne.s32.totalorder %s1120_s26, %s1378_s27  ;;  %p1384_p10 = scmp.lt.s32.totalorder %s1378_s27, %s1378_s27 }
  0x19   :  { %1343 = vset.pattern.permute.xlu0 %v1408_v3  ;;  %1345 = vset.pattern.permute.xlu1 %v1408_v3  ;;  %v42_v13 = vrot.slane %v28_v10, %v41_v8  ;;  %v56_v14 = vrot.slane %v28_v10, %v55_v9  ;;  %v1413_v3 = vmov 24  }
  0x1a   :  { %50 = vperm.xlu0 %1343, %v27_v1   ;;  %46 = vperm.xlu1 %1345, %v1442_v2   ;;  %p1385_p11 = por %p1384_p10, %p1383_p9 }
  0x1c   :  { %p1386_p12 = pnand %p1385_p11, %p1379_p8 }
  0x1e   :  { %1347 = vset.pattern.permute.xlu0 %v1409_v4  ;;  %1346 = vset.pattern.permute.xlu1 %v1409_v4 }
  0x1f   :  { %62 = vperm.xlu0 %1347, %v1442_v2   ;;  %66 = vperm.xlu1 %1346, %v27_v1  }
  0x23   :  { %81 = vrot.lane.b32.xlu1 %v1442_v2, %s1410_s0  ;;  %1348 = vset.pattern.permute.xlu0 %v1411_v5 }
  0x24   :  { %1349 = vset.pattern.permute.xlu1 %v1411_v5  ;;  %78 = vperm.xlu0 %1348, %v27_v1  }
  0x27   :  { %83 = vrot.lane.b32.xlu1 %v27_v1, %s1410_s0 }
  0x28   :  { %607 = vrot.lane.b32.xlu0 %v27_v1, %s1412_s23 }
  0x29   :  { %1351 = vset.pattern.permute.xlu0 %v1413_v3 }
  0x2b   :  { %74 = vperm.xlu1 %1349, %v1442_v2  }
  0x2f   :  { %605 = vrot.lane.b32.xlu1 %v1442_v2, %s1412_s23 }
  0x30   :  { %1350 = vset.pattern.permute.xlu1 %v1413_v3 }
  0x33   :  { %599 = vperm.xlu1 %1350, %v1442_v2  }
  0x94   :  { %v32_v11 = vpop.permute.xlu1 %31  ;;  %v37_v12 = vpop.permute.xlu0 %36 }
  0x95   :  { %v44_v15 = vmul.f32 %v42_v13, %v37_v12  ;;  %v43_v18 = vmul.f32 %v42_v13, %v32_v11 }
  0x99   :  { %v47_v16 = vpop.permute.xlu1 %46  ;;  %v51_v17 = vpop.permute.xlu0 %50 }
  0x9a   :  { %v57_v19 = vmul.f32 %v56_v14, %v47_v16  ;;  %v58_v20 = vmul.f32 %v56_v14, %v51_v17 }
  0x9c   :  { %v59_v21 = vadd.f32 %v57_v19, %v43_v18  ;;  %v60_v22 = vadd.f32 %v58_v20, %v44_v15 }
  0x9e   :  { %v63_v23 = vpop.permute.xlu0 %62  ;;  %v67_v24 = vpop.permute.xlu1 %66 }
  0x9f   :  { %v69_v25 = vadd.f32 %v63_v23, %v59_v21  ;;  %v70_v26 = vadd.f32 %v67_v24, %v60_v22 }
  0xa1   :  { %v71_v27 = vmax.f32 %v69_v25, 0.0  ;;  %v72_v28 = vmax.f32 %v70_v26, 0.0 }
  0xa2   :  { %v82_v29 = vpop.permute.xlu1 %81 }
  0xa3   :  { %v95_v30 = vand.u32 4294901760, %v71_v27  ;;  %v92_v31 = vsel %vm90_vm0, %v72_v28, 0  ;;  %v86_v32 = vsel %vm85_vm1, %v82_v29, 0  ;;  %v79_v4 = vpop.permute.xlu0 %78 }
  0xa4   :  { %v98_v33 = vand.u32 4294901760, %v92_v31  ;;  %v161_v34 = vand.u32 4294901760, %v86_v32 }
  0xa5   :  { %v183_v35 = vsub.f32 %v71_v27, %v95_v30 }
  0xa6   :  { %v1260_v36 = vpack.c.bf16 %v98_v33, %v95_v30  ;;  %v190_v37 = vsub.f32 %v92_v31, %v98_v33  ;;  %v162_v38 = vsub.f32 %v86_v32, %v161_v34  ;;  %v84_v39 = vpop.permute.xlu1 %83 }
  0xa7   :  { %v184_v40 = vand.u32 4294901760, %v183_v35  ;;  %v88_v41 = vsel %vm85_vm1, %v84_v39, 0  ;;  %v608_v5 = vpop.permute.xlu0 %607 }
  0xa8   :  { %v171_v42 = vand.u32 4294901760, %v88_v41  ;;  %1261 = vmatprep.subr.bf16.mxu0 %v1260_v36  ;;  %v163_v43 = vand.u32 4294901760, %v162_v38  ;;  %v191_v44 = vand.u32 4294901760, %v190_v37  ;;  %v1268_v56 = vpack.c.bf16 %v190_v37, %v183_v35 }
  0xa9   :  { %1263 = vmatpush3.bf16.msra.mxu0 %v1260_v36  ;;  %v185_v45 = vsub.f32 %v183_v35, %v184_v40  ;;  %v611_v10 = vsel %vm85_vm1, %v608_v5, 0 }
  0xaa   :  { %v172_v46 = vsub.f32 %v88_v41, %v171_v42  ;;  %v164_v47 = vsub.f32 %v162_v38, %v163_v43  ;;  %v192_v48 = vsub.f32 %v190_v37, %v191_v44  ;;  %v1276_v57 = vpack.c.bf16 %v191_v44, %v184_v40  ;;  %v75_v58 = vpop.permute.xlu1 %74 }
  0xab   :  { %v186_v49 = vand.u32 4294901760, %v185_v45  ;;  %v693_v11 = vand.u32 4294901760, %v611_v10 }
  0xac   :  { %v173_v50 = vand.u32 4294901760, %v172_v46  ;;  %v165_v51 = vand.u32 4294901760, %v164_v47  ;;  %v193_v52 = vand.u32 4294901760, %v192_v48 }
  0xad   :  { %v694_v12 = vsub.f32 %v611_v10, %v693_v11 }
  0xae   :  { %1180 = vmatprep.mubr.f32.mxu0 %v165_v51  ;;  %v1264_v53 = vpack.c.bf16 %v193_v52, %v186_v49  ;;  %v174_v54 = vsub.f32 %v172_v46, %v173_v50  ;;  %v606_v59 = vpop.permute.xlu1 %605 }
  0xaf   :  { %v609_v60 = vsel %vm85_vm1, %v606_v59, 0  ;;  %v695_v14 = vand.u32 4294901760, %v694_v12 }
  0xb0   :  { %1265 = vmatprep.subr.bf16.mxu0 %v1264_v53  ;;  %v175_v55 = vand.u32 4294901760, %v174_v54  ;;  %v683_v61 = vand.u32 4294901760, %v609_v60 }
  0xb1   :  { %v696_v19 = vsub.f32 %v694_v12, %v695_v14 }
  0xb2   :  { %1181 = vmatmul.mubr.f32.vlgmr.msra.gmra.mrb[0].mxu0 %v175_v55  ;;  %v684_v62 = vsub.f32 %v609_v60, %v683_v61  ;;  %v600_v32 = vpop.permute.xlu1 %599 }
  0xb3   :  { %1267 = vmatpush3.bf16.msra.mxu0 %v1264_v53  ;;  %1187 = vmatprep.mubr.f32.mxu0 %v161_v34  ;;  %v697_v25 = vand.u32 4294901760, %v696_v19 }
  0xb4   :  { %1269 = vmatprep.subr.bf16.mxu0 %v1268_v56  ;;  %v685_v63 = vand.u32 4294901760, %v684_v62 }
  0xb6   :  { %v686_v0 = vsub.f32 %v684_v62, %v685_v63 }
  0xb8   :  { %v687_v1 = vand.u32 4294901760, %v686_v0 }
  0xba   :  { %1188 = vmatmul.mubr.f32.vlgmr.msra.gmra.mrb[0].mxu0 %v171_v42  ;;  %1222 = vmatprep.mubr.f32.mxu1 %v687_v1 }
  0xbb   :  { %1271 = vmatpush3.bf16.msra.mxu0 %v1268_v56  ;;  %1194 = vmatprep.mubr.f32.mxu0 %v162_v38 }
  0xbc   :  { %1273 = vmatprep.subr.bf16.mxu0 %v1260_v36 }
  0xc2   :  { %1195 = vmatmul.mubr.f32.vlgmr.msra.gmra.mrb[0].mxu0 %v172_v46 }
  0xc3   :  { %1275 = vmatpush3.bf16.msra.mxu0 %v1260_v36  ;;  %1201 = vmatprep.mubr.f32.mxu0 %v163_v43 }
  0xc4   :  { %1277 = vmatprep.subr.bf16.mxu0 %v1276_v57 }
  0xca   :  { %1202 = vmatmul.mubr.f32.vlgmr.msra.gmra.mrb[0].mxu0 %v173_v50 }
  0xcb   :  { %1279 = vmatpush3.bf16.msra.mxu0 %v1276_v57  ;;  %1208 = vmatprep.mubr.f32.mxu0 %v161_v34 }
  0xcc   :  { %1281 = vmatprep.subr.bf16.mxu0 %v1260_v36 }
  0xd2   :  { %1209 = vmatmul.mubr.f32.vlgmr.msra.gmra.mrb[0].mxu0 %v171_v42 }
  0xd3   :  { %1283 = vmatpush3.bf16.msra.mxu0 %v1260_v36  ;;  %1215 = vmatprep.mubr.f32.mxu0 %v161_v34 }
  0xda   :  { %1216 = vmatmul.mubr.f32.vlgmr.msra.gmra.mrb[0].mxu0 %v171_v42 }
 0x1ad   :  { %v1217_v6 = vpop.f32.mrb[0].mxu0 }
 0x1ae   :  { %v1308_v7 = vadd.f32 %v1217_v6, %v79_v4  ;;  %v586_v8 = vpop.f32.mrb[1].mxu0 }
 0x1af   :  { %v1309_v9 = vadd.f32 %v586_v8, %v75_v58 }
 0x1b0   :  { %1352 = vtanh.f32 %v1308_v7 }
 0x1b1   :  { %1354 = vtanh.f32 %v1309_v9 }
 0x1ba   :  { %v1353_v13 = vpop.eup %1352 }
 0x1bb   :  { %v1355_v15 = vpop.eup %1354  ;;  %v614_v16 = vsel %vm90_vm0, %v1353_v13, 0 }
 0x1bc   :  { %v620_v17 = vand.u32 4294901760, %v614_v16  ;;  %v617_v18 = vand.u32 4294901760, %v1355_v15 }
 0x1be   :  { %v1284_v2 = vpack.c.bf16 %v620_v17, %v617_v18  ;;  %v704_v20 = vsub.f32 %v1355_v15, %v617_v18  ;;  %v711_v21 = vsub.f32 %v614_v16, %v620_v17 }
 0x1c0   :  { %1285 = vmatprep.subr.bf16.mxu1 %v1284_v2  ;;  %v705_v22 = vand.u32 4294901760, %v704_v20  ;;  %v712_v23 = vand.u32 4294901760, %v711_v21  ;;  %v1292_v24 = vpack.c.bf16 %v711_v21, %v704_v20 }
 0x1c1   :  { %1287 = vmatpush3.bf16.msra.mxu1 %v1284_v2 }
 0x1c2   :  { %v706_v26 = vsub.f32 %v704_v20, %v705_v22  ;;  %v713_v27 = vsub.f32 %v711_v21, %v712_v23  ;;  %v1300_v28 = vpack.c.bf16 %v712_v23, %v705_v22 }
 0x1c4   :  { %1223 = vmatmul.mubr.f32.vlgmr.msra.gmra.mrb[0].mxu1 %v697_v25  ;;  %v707_v29 = vand.u32 4294901760, %v706_v26  ;;  %v714_v30 = vand.u32 4294901760, %v713_v27 }
 0x1c5   :  { %1229 = vmatprep.mubr.f32.mxu1 %v683_v61 }
 0x1c6   :  { %v1288_v31 = vpack.c.bf16 %v714_v30, %v707_v29 }
 0x1c8   :  { %1289 = vmatprep.subr.bf16.mxu1 %v1288_v31 }
 0x1c9   :  { %1291 = vmatpush3.bf16.msra.mxu1 %v1288_v31 }
 0x1ca   :  { %1293 = vmatprep.subr.bf16.mxu1 %v1292_v24 }
 0x1cc   :  { %1230 = vmatmul.mubr.f32.vlgmr.msra.gmra.mrb[0].mxu1 %v693_v11 }
 0x1cd   :  { %1295 = vmatpush3.bf16.msra.mxu1 %v1292_v24  ;;  %1236 = vmatprep.mubr.f32.mxu1 %v684_v62 }
 0x1ce   :  { %1297 = vmatprep.subr.bf16.mxu1 %v1284_v2 }
 0x1d4   :  { %1237 = vmatmul.mubr.f32.vlgmr.msra.gmra.mrb[0].mxu1 %v694_v12 }
 0x1d5   :  { %1299 = vmatpush3.bf16.msra.mxu1 %v1284_v2  ;;  %1243 = vmatprep.mubr.f32.mxu1 %v685_v63 }
 0x1d6   :  { %1301 = vmatprep.subr.bf16.mxu1 %v1300_v28 }
 0x1dc   :  { %1244 = vmatmul.mubr.f32.vlgmr.msra.gmra.mrb[0].mxu1 %v695_v14 }
 0x1dd   :  { %1303 = vmatpush3.bf16.msra.mxu1 %v1300_v28  ;;  %1250 = vmatprep.mubr.f32.mxu1 %v683_v61 }
 0x1de   :  { %1305 = vmatprep.subr.bf16.mxu1 %v1284_v2 }
 0x1e4   :  { %1251 = vmatmul.mubr.f32.vlgmr.msra.gmra.mrb[0].mxu1 %v693_v11 }
 0x1e5   :  { %1307 = vmatpush3.bf16.msra.mxu1 %v1284_v2  ;;  %1257 = vmatprep.mubr.f32.mxu1 %v683_v61 }
 0x1ec   :  { %1258 = vmatmul.mubr.f32.vlgmr.msra.gmra.mrb[0].mxu1 %v693_v11 }
 0x2bf   :  { %v1259_v33 = vpop.f32.mrb[0].mxu1 }
 0x2c0   :  { %v1103_v34 = vpop.f32.mrb[1].mxu1 }
 0x2c1   :  { %v1310_v35 = vadd.f32 %v1103_v34, %v600_v32 }
 0x2c3   :  { %1112 = vst [vmem:[#allocation5] sm:$0x1f] %v1310_v35 }
 0x2c4   :  { %1389 = shalt.err (!%p1386_p12)
}
 0x2c5   :  { %s1390_s30 = scalar_lea.hbm %s1474_s2, 128 }
 0x2c6   :  { %p1391_p13 = scmp.ne.s32.totalorder %s1474_s2, %s1390_s30  ;;  %p1394_p0 = scmp.lt.u32.totalorder %s1390_s30, %s1474_s2 }
 0x2c8   :  { %p1396_p1 = pnand %p1394_p0, %p1391_p13 }
 0x2ca   :  { %1399 = shalt.err (!%p1396_p1)
}
 0x2cb   :  { %1122 = dma.vmem_to_hbm [thread:$0]  %s1120_s26, 128, %s1474_s2, [#allocation4]  }
 0x2cc   :  { %1402 = dma.done.wait [#allocation4], 128  }
 0x2cd   :  { %1403 = vsyncadd [#allocation4], 4294967168 }
 0x2ce   :  { %1126 = vsyncpa [#allocation3], 1 }
 0x2cf   :  { %1127 = vsyncpa [#allocation4], 1 }

</bundles_post_ra>
